<compile_context>
chip_gen: v5e
topology: v5e:2x2
jax: 0.10.0
libtpu: 0.0.40
codegen_flags: <defaults>
</compile_context>

<pallas_src>
import jax
import jax.numpy as jnp
from jax.experimental import pallas as pl
from jax.experimental.pallas import tpu as pltpu

LANE = 128


def _round_up(n, m):
    return (n + m - 1) // m * m


def _vae_fwd_kernel(x_ref, eps_ref,
                    we1_ref, be1_ref,
                    we2m_ref, be2m_ref, we2s_ref, be2s_ref,
                    wd1_ref, bd1_ref, wd2_ref, bd2_ref,
                    out_ref):
    # ---- encoder layer 1: (TB, Dp) @ (Dp, Hp) ----
    x = x_ref[...]                                                     # (TB, Dp) f32
    h = jnp.dot(x.astype(jnp.bfloat16), we1_ref[...],
                preferred_element_type=jnp.float32) + be1_ref[...]
    h = jnp.maximum(h, 0.0)                                            # ReLU, f32
    h_bf = h.astype(jnp.bfloat16)

    # ---- encoder heads: separate lane-aligned mu / log_sigma matmuls ----
    mu = jnp.dot(h_bf, we2m_ref[...],
                 preferred_element_type=jnp.float32) + be2m_ref[...]   # (TB, Zp) f32
    log_sig = jnp.dot(h_bf, we2s_ref[...],
                      preferred_element_type=jnp.float32) + be2s_ref[...]

    # ---- reparameterization (f32 elementwise; eps padded cols are zero) ----
    # TODO(synk): eps could be generated in-kernel (pltpu.prng_seed + stateful_normal)
    # to drop the eps DMA; kept as an explicit input for deterministic parity with torch.randn.
    z_sample = mu + jnp.exp(log_sig) * eps_ref[...]                    # (TB, Zp) f32

    # ---- decoder ----
    h2 = jnp.dot(z_sample.astype(jnp.bfloat16), wd1_ref[...],
                 preferred_element_type=jnp.float32) + bd1_ref[...]
    h2 = jnp.maximum(h2, 0.0)
    recon = jnp.dot(h2.astype(jnp.bfloat16), wd2_ref[...],
                    preferred_element_type=jnp.float32) + bd2_ref[...]  # (TB, Dp) f32

    out_ref[...] = recon.astype(out_ref.dtype)


def vae_forward(x_nchw, eps, params):
    """x_nchw: (B, C, H, W) f32; eps: (B, Z) f32; params: padded/bf16 weight dict."""
    B, C, H, W = x_nchw.shape
    D_in = C * H * W

    we1 = params["we1"]
    D_pad, H_pad = we1.shape
    Z_pad = params["we2_mu"].shape[1]

    # Batch tiling: pad to a sublane multiple (8), tile at up to 128 rows per grid step.
    B8 = _round_up(B, 8)
    tile_b = min(128, B8)
    B_pad = _round_up(B8, tile_b)
    n_tiles = B_pad // tile_b

    x_flat = x_nchw.reshape(B, D_in).astype(jnp.float32)
    x_p = jnp.zeros((B_pad, D_pad), jnp.float32).at[:B, :D_in].set(x_flat)
    eps_p = jnp.zeros((B_pad, Z_pad), jnp.float32).at[:B, :eps.shape[1]].set(eps)

    weights = [params[k] for k in
               ("we1", "be1", "we2_mu", "be2_mu", "we2_ls", "be2_ls",
                "wd1", "bd1", "wd2", "bd2")]

    row_map = lambda i: (i, 0)          # batch-tiled operands
    const_map = lambda i: (0, 0)        # weights: same block every step -> VMEM resident

    in_specs = [
        pl.BlockSpec((tile_b, D_pad), row_map),
        pl.BlockSpec((tile_b, Z_pad), row_map),
    ] + [pl.BlockSpec(w.shape, const_map) for w in weights]
    out_specs = pl.BlockSpec((tile_b, D_pad), row_map)

    # Advisory scheduling hint: 4 matmuls + exp; traffic dominated by weights + x + recon.
    flops = 2 * B_pad * (D_pad * H_pad + 2 * H_pad * Z_pad + Z_pad * H_pad + H_pad * D_pad)
    bytes_weights = sum(int(w.size) * w.dtype.itemsize for w in weights)
    bytes_accessed = (int(x_p.size) * 4 + int(eps_p.size) * 4
                      + int(B_pad * D_pad) * 4 + bytes_weights)
    cost = pl.CostEstimate(flops=int(flops),
                           transcendentals=int(B_pad * Z_pad),
                           bytes_accessed=int(bytes_accessed))

    recon_pad = pl.pallas_call(
        _vae_fwd_kernel,
        out_shape=jax.ShapeDtypeStruct((B_pad, D_pad), jnp.float32),
        grid=(n_tiles,),
        in_specs=in_specs,
        out_specs=out_specs,
        compiler_params=pltpu.CompilerParams(dimension_semantics=("parallel",)),
        cost_estimate=cost,
    )(x_p, eps_p, *weights)

    return recon_pad[:B, :D_in].reshape(B, C, H, W)


def init_params(key, d_in, hidden, z_dim):
    """Deterministic PyTorch-style (uniform +-1/sqrt(fan_in)) Linear init, logical sizes."""
    def linear(k, fan_in, fan_out):
        k1, k2 = jax.random.split(k)
        bound = 1.0 / jnp.sqrt(fan_in)
        w = jax.random.uniform(k1, (fan_in, fan_out), jnp.float32, -bound, bound)
        b = jax.random.uniform(k2, (1, fan_out), jnp.float32, -bound, bound)
        return w, b

    k1, k2, k3, k4 = jax.random.split(key, 4)
    we1, be1 = linear(k1, d_in, hidden)        # encoder layer 1
    we2, be2 = linear(k2, hidden, 2 * z_dim)   # encoder layer 2 -> [mu || log_sig]
    wd1, bd1 = linear(k3, z_dim, hidden)       # decoder layer 1
    wd2, bd2 = linear(k4, hidden, d_in)        # decoder layer 2
    return dict(we1=we1, be1=be1, we2=we2, be2=be2,
                wd1=wd1, bd1=bd1, wd2=wd2, bd2=bd2)


def pad_params(p, d_in, hidden, z_dim):
    """Zero-pad feature dims to lane multiples of 128, split mu/log_sig head,
    cast weights (matmul operands) to bf16, keep biases f32."""
    D_pad = _round_up(d_in, LANE)
    H_pad = _round_up(hidden, LANE)
    Z_pad = _round_up(z_dim, LANE)

    def pad2(a, r, c, dtype):
        out = jnp.zeros((r, c), dtype)
        return out.at[:a.shape[0], :a.shape[1]].set(a.astype(dtype))

    we2_mu, we2_ls = p["we2"][:, :z_dim], p["we2"][:, z_dim:]
    be2_mu, be2_ls = p["be2"][:, :z_dim], p["be2"][:, z_dim:]

    return dict(
        we1=pad2(p["we1"], D_pad, H_pad, jnp.bfloat16),
        be1=pad2(p["be1"], 1, H_pad, jnp.float32),
        we2_mu=pad2(we2_mu, H_pad, Z_pad, jnp.bfloat16),
        be2_mu=pad2(be2_mu, 1, Z_pad, jnp.float32),
        we2_ls=pad2(we2_ls, H_pad, Z_pad, jnp.bfloat16),
        be2_ls=pad2(be2_ls, 1, Z_pad, jnp.float32),
        wd1=pad2(p["wd1"], Z_pad, H_pad, jnp.bfloat16),
        bd1=pad2(p["bd1"], 1, H_pad, jnp.float32),
        wd2=pad2(p["wd2"], H_pad, D_pad, jnp.bfloat16),
        bd2=pad2(p["bd2"], 1, D_pad, jnp.float32),
    )


def vae_forward_ref(x_nchw, eps, params):
    """Pure-JAX reference mirroring the kernel's numerics (bf16 dot operands, f32 accum)."""
    B, C, H, W = x_nchw.shape
    D_in = C * H * W
    D_pad = params["we1"].shape[0]
    Z_pad = params["we2_mu"].shape[1]

    x = jnp.zeros((B, D_pad), jnp.float32).at[:, :D_in].set(x_nchw.reshape(B, D_in))
    eps_p = jnp.zeros((B, Z_pad), jnp.float32).at[:, :eps.shape[1]].set(eps)

    def mm(a, w):
        return jnp.dot(a.astype(jnp.bfloat16), w, preferred_element_type=jnp.float32)

    h = jnp.maximum(mm(x, params["we1"]) + params["be1"], 0.0)
    mu = mm(h, params["we2_mu"]) + params["be2_mu"]
    log_sig = mm(h, params["we2_ls"]) + params["be2_ls"]
    zs = mu + jnp.exp(log_sig) * eps_p
    h2 = jnp.maximum(mm(zs, params["wd1"]) + params["bd1"], 0.0)
    recon = mm(h2, params["wd2"]) + params["bd2"]
    return recon[:, :D_in].reshape(B, C, H, W)


if __name__ == "__main__":
    B, C, H, W = 2, 4, 16, 16
    HIDDEN, Z = 32, 8
    D_IN = C * H * W

    key = jax.random.PRNGKey(0)
    k_x, k_eps, k_p = jax.random.split(key, 3)

    x = jax.random.normal(k_x, (B, C, H, W), jnp.float32)
    eps = jax.random.normal(k_eps, (B, Z), jnp.float32)   # reparameterization noise
    params = pad_params(init_params(k_p, D_IN, HIDDEN, Z), D_IN, HIDDEN, Z)

    recon = jax.jit(vae_forward)(x, eps, params)
    jax.block_until_ready(recon)
    assert recon.shape == (B, C, H, W) and recon.dtype == jnp.float32

    ref = vae_forward_ref(x, eps, params)
    max_diff = float(jnp.max(jnp.abs(recon - ref)))
    assert max_diff < 2e-2, f"kernel/reference mismatch: max|diff|={max_diff}"

    print("KERNEL_OK")
</pallas_src>

<mosaic_0001>
module attributes {stable_mosaic.version = 11 : i64} {
  func.func @_vae_fwd_kernel(%arg0: i32, %arg1: memref<8x1024xf32, #tpu.memory_space<vmem>>, %arg2: memref<8x128xf32, #tpu.memory_space<vmem>>, %arg3: memref<1024x128xbf16, #tpu.memory_space<vmem>>, %arg4: memref<1x128xf32, #tpu.memory_space<vmem>>, %arg5: memref<128x128xbf16, #tpu.memory_space<vmem>>, %arg6: memref<1x128xf32, #tpu.memory_space<vmem>>, %arg7: memref<128x128xbf16, #tpu.memory_space<vmem>>, %arg8: memref<1x128xf32, #tpu.memory_space<vmem>>, %arg9: memref<128x128xbf16, #tpu.memory_space<vmem>>, %arg10: memref<1x128xf32, #tpu.memory_space<vmem>>, %arg11: memref<128x1024xbf16, #tpu.memory_space<vmem>>, %arg12: memref<1x1024xf32, #tpu.memory_space<vmem>>, %arg13: memref<8x1024xf32, #tpu.memory_space<vmem>>) attributes {dimension_semantics = [#tpu.dimension_semantics<parallel>], iteration_bounds = array<i64: 1>, scalar_prefetch = 0 : i64, scratch_operands = 0 : i64, tpu.core_type = #tpu.core_type<tc>, window_params = [{transform_indices = @transform_0, window_bounds = array<i64: 8, 1024>}, {transform_indices = @transform_1, window_bounds = array<i64: 8, 128>}, {pipeline_mode = #tpu.pipeline_mode<synchronous>, transform_indices = @transform_2, window_bounds = array<i64: 1024, 128>}, {pipeline_mode = #tpu.pipeline_mode<synchronous>, transform_indices = @transform_3, window_bounds = array<i64: 1, 128>}, {pipeline_mode = #tpu.pipeline_mode<synchronous>, transform_indices = @transform_4, window_bounds = array<i64: 128, 128>}, {pipeline_mode = #tpu.pipeline_mode<synchronous>, transform_indices = @transform_5, window_bounds = array<i64: 1, 128>}, {pipeline_mode = #tpu.pipeline_mode<synchronous>, transform_indices = @transform_6, window_bounds = array<i64: 128, 128>}, {pipeline_mode = #tpu.pipeline_mode<synchronous>, transform_indices = @transform_7, window_bounds = array<i64: 1, 128>}, {pipeline_mode = #tpu.pipeline_mode<synchronous>, transform_indices = @transform_8, window_bounds = array<i64: 128, 128>}, {pipeline_mode = #tpu.pipeline_mode<synchronous>, transform_indices = @transform_9, window_bounds = array<i64: 1, 128>}, {pipeline_mode = #tpu.pipeline_mode<synchronous>, transform_indices = @transform_10, window_bounds = array<i64: 128, 1024>}, {pipeline_mode = #tpu.pipeline_mode<synchronous>, transform_indices = @transform_11, window_bounds = array<i64: 1, 1024>}, {transform_indices = @transform_12, window_bounds = array<i64: 8, 1024>}]} {
    %c0 = arith.constant 0 : index
    %c0_0 = arith.constant 0 : index
    %0 = vector.load %arg1[%c0, %c0_0] : memref<8x1024xf32, #tpu.memory_space<vmem>>, vector<8x1024xf32>
    %1 = arith.truncf %0 : vector<8x1024xf32> to vector<8x1024xbf16>
    %c0_1 = arith.constant 0 : index
    %c0_2 = arith.constant 0 : index
    %2 = vector.load %arg3[%c0_1, %c0_2] : memref<1024x128xbf16, #tpu.memory_space<vmem>>, vector<1024x128xbf16>
    %cst = arith.constant dense<0.000000e+00> : vector<8x128xf32>
    %3 = tpu.matmul %1, %2, %cst {dimension_numbers = #tpu.dot_dimension_numbers<[1], [0], [0], [1], [0, 0, 1, 1], [], []>} : vector<8x1024xbf16>, vector<1024x128xbf16>, vector<8x128xf32> -> vector<8x128xf32>
    %c0_3 = arith.constant 0 : index
    %c0_4 = arith.constant 0 : index
    %4 = vector.load %arg4[%c0_3, %c0_4] : memref<1x128xf32, #tpu.memory_space<vmem>>, vector<1x128xf32>
    %5 = vector.broadcast %4 : vector<1x128xf32> to vector<8x128xf32>
    %6 = arith.addf %3, %5 : vector<8x128xf32>
    %cst_5 = arith.constant 0.000000e+00 : f32
    %7 = vector.broadcast %cst_5 : f32 to vector<8x128xf32>
    %8 = arith.maximumf %6, %7 : vector<8x128xf32>
    %9 = arith.truncf %8 : vector<8x128xf32> to vector<8x128xbf16>
    %c0_6 = arith.constant 0 : index
    %c0_7 = arith.constant 0 : index
    %10 = vector.load %arg5[%c0_6, %c0_7] : memref<128x128xbf16, #tpu.memory_space<vmem>>, vector<128x128xbf16>
    %cst_8 = arith.constant dense<0.000000e+00> : vector<8x128xf32>
    %11 = tpu.matmul %9, %10, %cst_8 {dimension_numbers = #tpu.dot_dimension_numbers<[1], [0], [0], [1], [0, 0, 1, 1], [], []>} : vector<8x128xbf16>, vector<128x128xbf16>, vector<8x128xf32> -> vector<8x128xf32>
    %c0_9 = arith.constant 0 : index
    %c0_10 = arith.constant 0 : index
    %12 = vector.load %arg6[%c0_9, %c0_10] : memref<1x128xf32, #tpu.memory_space<vmem>>, vector<1x128xf32>
    %13 = vector.broadcast %12 : vector<1x128xf32> to vector<8x128xf32>
    %14 = arith.addf %11, %13 : vector<8x128xf32>
    %c0_11 = arith.constant 0 : index
    %c0_12 = arith.constant 0 : index
    %15 = vector.load %arg7[%c0_11, %c0_12] : memref<128x128xbf16, #tpu.memory_space<vmem>>, vector<128x128xbf16>
    %cst_13 = arith.constant dense<0.000000e+00> : vector<8x128xf32>
    %16 = tpu.matmul %9, %15, %cst_13 {dimension_numbers = #tpu.dot_dimension_numbers<[1], [0], [0], [1], [0, 0, 1, 1], [], []>} : vector<8x128xbf16>, vector<128x128xbf16>, vector<8x128xf32> -> vector<8x128xf32>
    %c0_14 = arith.constant 0 : index
    %c0_15 = arith.constant 0 : index
    %17 = vector.load %arg8[%c0_14, %c0_15] : memref<1x128xf32, #tpu.memory_space<vmem>>, vector<1x128xf32>
    %18 = vector.broadcast %17 : vector<1x128xf32> to vector<8x128xf32>
    %19 = arith.addf %16, %18 : vector<8x128xf32>
    %20 = math.exp %19 : vector<8x128xf32>
    %c0_16 = arith.constant 0 : index
    %c0_17 = arith.constant 0 : index
    %21 = vector.load %arg2[%c0_16, %c0_17] : memref<8x128xf32, #tpu.memory_space<vmem>>, vector<8x128xf32>
    %22 = arith.mulf %20, %21 : vector<8x128xf32>
    %23 = arith.addf %14, %22 : vector<8x128xf32>
    %24 = arith.truncf %23 : vector<8x128xf32> to vector<8x128xbf16>
    %c0_18 = arith.constant 0 : index
    %c0_19 = arith.constant 0 : index
    %25 = vector.load %arg9[%c0_18, %c0_19] : memref<128x128xbf16, #tpu.memory_space<vmem>>, vector<128x128xbf16>
    %cst_20 = arith.constant dense<0.000000e+00> : vector<8x128xf32>
    %26 = tpu.matmul %24, %25, %cst_20 {dimension_numbers = #tpu.dot_dimension_numbers<[1], [0], [0], [1], [0, 0, 1, 1], [], []>} : vector<8x128xbf16>, vector<128x128xbf16>, vector<8x128xf32> -> vector<8x128xf32>
    %c0_21 = arith.constant 0 : index
    %c0_22 = arith.constant 0 : index
    %27 = vector.load %arg10[%c0_21, %c0_22] : memref<1x128xf32, #tpu.memory_space<vmem>>, vector<1x128xf32>
    %28 = vector.broadcast %27 : vector<1x128xf32> to vector<8x128xf32>
    %29 = arith.addf %26, %28 : vector<8x128xf32>
    %cst_23 = arith.constant 0.000000e+00 : f32
    %30 = vector.broadcast %cst_23 : f32 to vector<8x128xf32>
    %31 = arith.maximumf %29, %30 : vector<8x128xf32>
    %32 = arith.truncf %31 : vector<8x128xf32> to vector<8x128xbf16>
    %c0_24 = arith.constant 0 : index
    %c0_25 = arith.constant 0 : index
    %33 = vector.load %arg11[%c0_24, %c0_25] : memref<128x1024xbf16, #tpu.memory_space<vmem>>, vector<128x1024xbf16>
    %cst_26 = arith.constant dense<0.000000e+00> : vector<8x1024xf32>
    %34 = tpu.matmul %32, %33, %cst_26 {dimension_numbers = #tpu.dot_dimension_numbers<[1], [0], [0], [1], [0, 0, 1, 1], [], []>} : vector<8x128xbf16>, vector<128x1024xbf16>, vector<8x1024xf32> -> vector<8x1024xf32>
    %c0_27 = arith.constant 0 : index
    %c0_28 = arith.constant 0 : index
    %35 = vector.load %arg12[%c0_27, %c0_28] : memref<1x1024xf32, #tpu.memory_space<vmem>>, vector<1x1024xf32>
    %36 = vector.broadcast %35 : vector<1x1024xf32> to vector<8x1024xf32>
    %37 = arith.addf %34, %36 : vector<8x1024xf32>
    %c0_29 = arith.constant 0 : index
    %c0_30 = arith.constant 0 : index
    %38 = vector.load %arg13[%c0_29, %c0_30] : memref<8x1024xf32, #tpu.memory_space<vmem>>, vector<8x1024xf32>
    tpu.vector_store %arg13[%c0_29, %c0_30], %37 {strides = array<i32>} : memref<8x1024xf32, #tpu.memory_space<vmem>>, vector<8x1024xf32>,
    return
  }
  func.func @transform_0(%arg0: i32) -> (i32, i32) {
    %c0_i32 = arith.constant 0 : i32
    %c0_i32_0 = arith.constant 0 : i32
    return %arg0, %c0_i32 : i32, i32
  }
  func.func @transform_1(%arg0: i32) -> (i32, i32) {
    %c0_i32 = arith.constant 0 : i32
    %c0_i32_0 = arith.constant 0 : i32
    return %arg0, %c0_i32 : i32, i32
  }
  func.func @transform_2(%arg0: i32) -> (i32, i32) {
    %c0_i32 = arith.constant 0 : i32
    %c0_i32_0 = arith.constant 0 : i32
    %c0_i32_1 = arith.constant 0 : i32
    return %c0_i32, %c0_i32_0 : i32, i32
  }
  func.func @transform_3(%arg0: i32) -> (i32, i32) {
    %c0_i32 = arith.constant 0 : i32
    %c0_i32_0 = arith.constant 0 : i32
    %c0_i32_1 = arith.constant 0 : i32
    return %c0_i32, %c0_i32_0 : i32, i32
  }
  func.func @transform_4(%arg0: i32) -> (i32, i32) {
    %c0_i32 = arith.constant 0 : i32
    %c0_i32_0 = arith.constant 0 : i32
    %c0_i32_1 = arith.constant 0 : i32
    return %c0_i32, %c0_i32_0 : i32, i32
  }
  func.func @transform_5(%arg0: i32) -> (i32, i32) {
    %c0_i32 = arith.constant 0 : i32
    %c0_i32_0 = arith.constant 0 : i32
    %c0_i32_1 = arith.constant 0 : i32
    return %c0_i32, %c0_i32_0 : i32, i32
  }
  func.func @transform_6(%arg0: i32) -> (i32, i32) {
    %c0_i32 = arith.constant 0 : i32
    %c0_i32_0 = arith.constant 0 : i32
    %c0_i32_1 = arith.constant 0 : i32
    return %c0_i32, %c0_i32_0 : i32, i32
  }
  func.func @transform_7(%arg0: i32) -> (i32, i32) {
    %c0_i32 = arith.constant 0 : i32
    %c0_i32_0 = arith.constant 0 : i32
    %c0_i32_1 = arith.constant 0 : i32
    return %c0_i32, %c0_i32_0 : i32, i32
  }
  func.func @transform_8(%arg0: i32) -> (i32, i32) {
    %c0_i32 = arith.constant 0 : i32
    %c0_i32_0 = arith.constant 0 : i32
    %c0_i32_1 = arith.constant 0 : i32
    return %c0_i32, %c0_i32_0 : i32, i32
  }
  func.func @transform_9(%arg0: i32) -> (i32, i32) {
    %c0_i32 = arith.constant 0 : i32
    %c0_i32_0 = arith.constant 0 : i32
    %c0_i32_1 = arith.constant 0 : i32
    return %c0_i32, %c0_i32_0 : i32, i32
  }
  func.func @transform_10(%arg0: i32) -> (i32, i32) {
    %c0_i32 = arith.constant 0 : i32
    %c0_i32_0 = arith.constant 0 : i32
    %c0_i32_1 = arith.constant 0 : i32
    return %c0_i32, %c0_i32_0 : i32, i32
  }
  func.func @transform_11(%arg0: i32) -> (i32, i32) {
    %c0_i32 = arith.constant 0 : i32
    %c0_i32_0 = arith.constant 0 : i32
    %c0_i32_1 = arith.constant 0 : i32
    return %c0_i32, %c0_i32_0 : i32, i32
  }
  func.func @transform_12(%arg0: i32) -> (i32, i32) {
    %c0_i32 = arith.constant 0 : i32
    %c0_i32_0 = arith.constant 0 : i32
    return %arg0, %c0_i32 : i32, i32
  }
}

</mosaic_0001>

<bundles_post_ra>
// kernel: vae_forward.1
= control target key start
LH: loop header
LB: loop body
LE: loop exit
PB: predicated region body
PF: predicated region fallthrough
CT: control target
= control target key end

     0   :  { %17 = vsyncpa [#allocation3], 0  ;;  %s2521_s0 = inlined_call_operand.vmem [shape: f32[8,1024], index: 0, kind: input, shape index: {}]   ;;  %s2522_s1 = inlined_call_operand.vmem [shape: f32[8,128], index: 1, kind: input, shape index: {}]   ;;  %s2523_s2 = inlined_call_operand.hbm [shape: bf16[1024,128], index: 2, kind: input, shape index: {}]   ;;  %s2524_s3 = inlined_call_operand.vmem [shape: f32[1,128], index: 3, kind: input, shape index: {}]   ;;  %s2525_s4 = inlined_call_operand.vmem [shape: bf16[128,128], index: 4, kind: input, shape index: {}]   ;;  %s2526_s5 = inlined_call_operand.vmem [shape: f32[1,128], index: 5, kind: input, shape index: {}]   ;;  %s2527_s6 = inlined_call_operand.vmem [shape: bf16[128,128], index: 6, kind: input, shape index: {}]   ;;  %s2528_s7 = inlined_call_operand.vmem [shape: f32[1,128], index: 7, kind: input, shape index: {}]   ;;  %s2529_s8 = inlined_call_operand.vmem [shape: bf16[128,128], index: 8, kind: input, shape index: {}]   ;;  %s2530_s9 = inlined_call_operand.vmem [shape: f32[1,128], index: 9, kind: input, shape index: {}]   ;;  %s2531_s10 = inlined_call_operand.hbm [shape: bf16[128,1024], index: 10, kind: input, shape index: {}]   ;;  %s2532_s11 = inlined_call_operand.vmem [shape: f32[1,1024], index: 11, kind: input, shape index: {}]   ;;  %s2533_s12 = inlined_call_operand.vmem [shape: f32[8,1024], index: 12, kind: output, shape index: {}]  }
   0x1   :  { %s27_s23 = sshll.u32 %s2523_s2, 4  ;;  %s28_s23 = int_to_ptr.hbm [resolvable:$true] %s27_s23 }
   0x2   :  { %18 = vsyncpa [#allocation5], 0  ;;  %s2306_s24 = smov [#allocation2]   ;;  %s54_s28 = sshll.u32 %s2531_s10, 4  ;;  %s55_s28 = int_to_ptr.hbm [resolvable:$true] %s54_s28 }
   0x3   :  { %s29_s25 = sshll.u32 %s2306_s24, 4  ;;  %s2307_s29 = smov 64   ;;  %s30_s25 = int_to_ptr.vmem [resolvable:$true] %s29_s25 }
   0x4   :  { %s2308_s30 = smov 4   ;;  %s2309_s13 = smov [#allocation4]  }
   0x5   :  { %35 = dma.hbm_to_vmem [thread:$0]  %s28_s23, 8192, %s30_s25, [#allocation3], %s2307_s29, %s2307_s29, %s2308_s30  }
   0x6   :  { %s56_s14 = sshll.u32 %s2309_s13, 4  ;;  %s2310_s15 = smov 512   ;;  %s57_s14 = int_to_ptr.vmem [resolvable:$true] %s56_s14 }
   0x7   :  { %s2311_s16 = smov 32  }
   0x8   :  { %62 = dma.hbm_to_vmem [thread:$0]  %s55_s28, 8192, %s57_s14, [#allocation5], %s2310_s15, %s2310_s15, %s2311_s16  }
   0x9   :  { %2302 = dma.done.wait [#allocation3], 8192  }
   0xa   :  { %2303 = vsyncadd [#allocation3], 4294959104 }
   0xb   :  { %2304 = dma.done.wait [#allocation5], 8192  }
   0xc   :  { %2305 = vsyncadd [#allocation5], 4294959104  ;;  %v2097_v0 = vld [vmem:[#allocation2 + $0x38] sm:$0xff]  ;;  %v2096_v4 = vld [vmem:[#allocation2 + $0x30] sm:$0xff] }
   0xd   :  { %v2105_v1 = vld [vmem:[#allocation2 + $0x78] sm:$0xff]  ;;  %605 = vmatpush.bf16.msra.mxu0 %v2097_v0  ;;  %v2104_v5 = vld [vmem:[#allocation2 + $0x70] sm:$0xff]  ;;  %v2095_v8 = vld [vmem:[#allocation2 + $0x28] sm:$0xff] }
   0xe   :  { %v2113_v2 = vld [vmem:[#allocation2 + $0xb8] sm:$0xff]  ;;  %618 = vmatpush.bf16.msra.mxu1 %v2105_v1  ;;  %v2112_v6 = vld [vmem:[#allocation2 + $0xb0] sm:$0xff]  ;;  %v2103_v9 = vld [vmem:[#allocation2 + $0x68] sm:$0xff] }
   0xf   :  { %v2121_v3 = vld [vmem:[#allocation2 + $0xf8] sm:$0xff]  ;;  %631 = vmatpush.bf16.msra.mxu2 %v2113_v2  ;;  %v2120_v7 = vld [vmem:[#allocation2 + $0xf0] sm:$0xff]  ;;  %v2111_v10 = vld [vmem:[#allocation2 + $0xa8] sm:$0xff] }
  0x10   :  { %644 = vmatpush.bf16.msra.mxu3 %v2121_v3  ;;  %v2119_v11 = vld [vmem:[#allocation2 + $0xe8] sm:$0xff]  ;;  %v2094_v12 = vld [vmem:[#allocation2 + $0x20] sm:$0xff]  ;;  %v2093_v16 = vld [vmem:[#allocation2 + $0x18] sm:$0xff] }
  0x11   :  { %606 = vmatpush.bf16.msra.mxu0 %v2096_v4  ;;  %v2102_v13 = vld [vmem:[#allocation2 + $0x60] sm:$0xff]  ;;  %v2101_v17 = vld [vmem:[#allocation2 + $0x58] sm:$0xff]  ;;  %v2092_v20 = vld [vmem:[#allocation2 + $0x10] sm:$0xff] }
  0x12   :  { %619 = vmatpush.bf16.msra.mxu1 %v2104_v5  ;;  %v2110_v14 = vld [vmem:[#allocation2 + $0xa0] sm:$0xff]  ;;  %v2109_v18 = vld [vmem:[#allocation2 + $0x98] sm:$0xff]  ;;  %v2100_v21 = vld [vmem:[#allocation2 + $0x50] sm:$0xff] }
  0x13   :  { %632 = vmatpush.bf16.msra.mxu2 %v2112_v6  ;;  %v2118_v15 = vld [vmem:[#allocation2 + $0xe0] sm:$0xff]  ;;  %v2117_v19 = vld [vmem:[#allocation2 + $0xd8] sm:$0xff]  ;;  %v2108_v22 = vld [vmem:[#allocation2 + $0x90] sm:$0xff] }
  0x14   :  { %645 = vmatpush.bf16.msra.mxu3 %v2120_v7  ;;  %v2116_v23 = vld [vmem:[#allocation2 + $0xd0] sm:$0xff]  ;;  %v2091_v24 = vld [vmem:[#allocation2 + $0x8] sm:$0xff]  ;;  %v2090_v28 = vld [vmem:[#allocation2] sm:$0xff] }
  0x15   :  { %607 = vmatpush.bf16.msra.mxu0 %v2095_v8  ;;  %v2099_v25 = vld [vmem:[#allocation2 + $0x48] sm:$0xff]  ;;  %v2098_v29 = vld [vmem:[#allocation2 + $0x40] sm:$0xff]  ;;  %v2129_v32 = vld [vmem:[#allocation2 + $0x138] sm:$0xff] }
  0x16   :  { %620 = vmatpush.bf16.msra.mxu1 %v2103_v9  ;;  %v2107_v26 = vld [vmem:[#allocation2 + $0x88] sm:$0xff]  ;;  %v2106_v30 = vld [vmem:[#allocation2 + $0x80] sm:$0xff]  ;;  %v75_v33 = vld [vmem:[%s2521_s0 + $0x10] sm:$0xff] }
  0x17   :  { %633 = vmatpush.bf16.msra.mxu2 %v2111_v10  ;;  %v2115_v27 = vld [vmem:[#allocation2 + $0xc8] sm:$0xff]  ;;  %v2114_v31 = vld [vmem:[#allocation2 + $0xc0] sm:$0xff]  ;;  %v2137_v35 = vld [vmem:[#allocation2 + $0x178] sm:$0xff]  ;;  %v83_v40 = vpack.c.bf16 %v75_v33, %v75_v33 }
  0x18   :  { %646 = vmatpush.bf16.msra.mxu3 %v2119_v11  ;;  %v73_v34 = vld [vmem:[%s2521_s0] sm:$0xff]  ;;  %v76_v36 = vld [vmem:[%s2521_s0 + $0x18] sm:$0xff]  ;;  %v74_v37 = vld [vmem:[%s2521_s0 + $0x8] sm:$0xff] }
  0x19   :  { %608 = vmatpush.bf16.msra.mxu0 %v2094_v12  ;;  %v2145_v38 = vld [vmem:[#allocation2 + $0x1b8] sm:$0xff]  ;;  %v81_v41 = vpack.c.bf16 %v73_v34, %v73_v34  ;;  %v84_v42 = vpack.c.bf16 %v76_v36, %v76_v36  ;;  %v82_v43 = vpack.c.bf16 %v74_v37, %v74_v37  ;;  %v2128_v44 = vld [vmem:[#allocation2 + $0x130] sm:$0xff]  ;;  %v2127_v48 = vld [vmem:[#allocation2 + $0x128] sm:$0xff] }
  0x1a   :  { %621 = vmatpush.bf16.msra.mxu1 %v2102_v13  ;;  %v2153_v39 = vld [vmem:[#allocation2 + $0x1f8] sm:$0xff]  ;;  %v2136_v45 = vld [vmem:[#allocation2 + $0x170] sm:$0xff]  ;;  %v2135_v49 = vld [vmem:[#allocation2 + $0x168] sm:$0xff] }
  0x1b   :  { %634 = vmatpush.bf16.msra.mxu2 %v2110_v14  ;;  %v2144_v46 = vld [vmem:[#allocation2 + $0x1b0] sm:$0xff]  ;;  %v2143_v50 = vld [vmem:[#allocation2 + $0x1a8] sm:$0xff]  ;;  %v2126_v52 = vld [vmem:[#allocation2 + $0x120] sm:$0xff] }
  0x1c   :  { %647 = vmatpush.bf16.msra.mxu3 %v2118_v15  ;;  %v2152_v47 = vld [vmem:[#allocation2 + $0x1f0] sm:$0xff]  ;;  %v2151_v51 = vld [vmem:[#allocation2 + $0x1e8] sm:$0xff]  ;;  %v2134_v53 = vld [vmem:[#allocation2 + $0x160] sm:$0xff] }
  0x1d   :  { %609 = vmatpush.bf16.msra.mxu0 %v2093_v16  ;;  %v2142_v54 = vld [vmem:[#allocation2 + $0x1a0] sm:$0xff]  ;;  %v2125_v56 = vld [vmem:[#allocation2 + $0x118] sm:$0xff]  ;;  %v2124_v60 = vld [vmem:[#allocation2 + $0x110] sm:$0xff] }
  0x1e   :  { %622 = vmatpush.bf16.msra.mxu1 %v2101_v17  ;;  %v2150_v55 = vld [vmem:[#allocation2 + $0x1e0] sm:$0xff]  ;;  %v2133_v57 = vld [vmem:[#allocation2 + $0x158] sm:$0xff]  ;;  %v2132_v61 = vld [vmem:[#allocation2 + $0x150] sm:$0xff] }
  0x1f   :  { %635 = vmatpush.bf16.msra.mxu2 %v2109_v18  ;;  %v2141_v58 = vld [vmem:[#allocation2 + $0x198] sm:$0xff]  ;;  %v2140_v62 = vld [vmem:[#allocation2 + $0x190] sm:$0xff]  ;;  %v2123_v0 = vld [vmem:[#allocation2 + $0x108] sm:$0xff] }
  0x20   :  { %648 = vmatpush.bf16.msra.mxu3 %v2117_v19  ;;  %v2149_v59 = vld [vmem:[#allocation2 + $0x1d8] sm:$0xff]  ;;  %v2148_v63 = vld [vmem:[#allocation2 + $0x1d0] sm:$0xff]  ;;  %v2131_v1 = vld [vmem:[#allocation2 + $0x148] sm:$0xff] }
  0x21   :  { %610 = vmatpush.bf16.msra.mxu0 %v2092_v20  ;;  %v2139_v2 = vld [vmem:[#allocation2 + $0x188] sm:$0xff]  ;;  %v2122_v4 = vld [vmem:[#allocation2 + $0x100] sm:$0xff]  ;;  %v79_v10 = vld [vmem:[%s2521_s0 + $0x30] sm:$0xff] }
  0x22   :  { %623 = vmatpush.bf16.msra.mxu1 %v2100_v21  ;;  %v2147_v3 = vld [vmem:[#allocation2 + $0x1c8] sm:$0xff]  ;;  %v2130_v5 = vld [vmem:[#allocation2 + $0x140] sm:$0xff]  ;;  %v80_v11 = vld [vmem:[%s2521_s0 + $0x38] sm:$0xff]  ;;  %v87_v14 = vpack.c.bf16 %v79_v10, %v79_v10 }
  0x23   :  { %636 = vmatpush.bf16.msra.mxu2 %v2108_v22  ;;  %v2138_v6 = vld [vmem:[#allocation2 + $0x180] sm:$0xff]  ;;  %v78_v8 = vld [vmem:[%s2521_s0 + $0x28] sm:$0xff]  ;;  %v88_v15 = vpack.c.bf16 %v80_v11, %v80_v11  ;;  %v2161_v16 = vld [vmem:[%s2525_s4 + $0x38] sm:$0xff] }
  0x24   :  { %649 = vmatpush.bf16.msra.mxu3 %v2116_v23  ;;  %v77_v7 = vld [vmem:[%s2521_s0 + $0x20] sm:$0xff]  ;;  %v86_v13 = vpack.c.bf16 %v78_v8, %v78_v8  ;;  %v2169_v17 = vld [vmem:[%s2527_s6 + $0x38] sm:$0xff]  ;;  %v2160_v18 = vld [vmem:[%s2525_s4 + $0x30] sm:$0xff] }
  0x25   :  { %611 = vmatpush.bf16.msra.mxu0 %v2091_v24  ;;  %v2146_v9 = vld [vmem:[#allocation2 + $0x1c0] sm:$0xff]  ;;  %v85_v12 = vpack.c.bf16 %v77_v7, %v77_v7  ;;  %v2168_v19 = vld [vmem:[%s2527_s6 + $0x30] sm:$0xff]  ;;  %v2159_v20 = vld [vmem:[%s2525_s4 + $0x28] sm:$0xff] }
  0x26   :  { %624 = vmatpush.bf16.msra.mxu1 %v2099_v25  ;;  %v2167_v21 = vld [vmem:[%s2527_s6 + $0x28] sm:$0xff]  ;;  %v2158_v22 = vld [vmem:[%s2525_s4 + $0x20] sm:$0xff]  ;;  %v2157_v24 = vld [vmem:[%s2525_s4 + $0x18] sm:$0xff] }
  0x27   :  { %637 = vmatpush.bf16.msra.mxu2 %v2107_v26  ;;  %v2166_v23 = vld [vmem:[%s2527_s6 + $0x20] sm:$0xff]  ;;  %v2165_v25 = vld [vmem:[%s2527_s6 + $0x18] sm:$0xff]  ;;  %v2068_v8 = vld [vmem:[#allocation4 + $0x1c8] sm:$0xf] }
  0x28   :  { %650 = vmatpush.bf16.msra.mxu3 %v2115_v27  ;;  %v2156_v27 = vld [vmem:[%s2525_s4 + $0x10] sm:$0xff]  ;;  %v2162_v36 = vld [vmem:[%s2527_s6] sm:$0xff] }
  0x29   :  { %612 = vmatpush.bf16.msra.mxu0 %v2090_v28  ;;  %v2164_v28 = vld [vmem:[%s2527_s6 + $0x10] sm:$0xff]  ;;  %v2062_v7 = vld [vmem:[#allocation4 + $0x1e0] sm:$0xf0] }
  0x2a   :  { %625 = vmatpush.bf16.msra.mxu1 %v2098_v29 }
  0x2b   :  { %638 = vmatpush.bf16.msra.mxu2 %v2106_v30  ;;  %v2155_v30 = vld [vmem:[%s2525_s4 + $0x8] sm:$0xff] }
  0x2c   :  { %651 = vmatpush.bf16.msra.mxu3 %v2114_v31  ;;  %613 = vmatmul.bf16.vlgmr.msra.gmra.mxu0 %v81_v41  ;;  %v2163_v31 = vld [vmem:[%s2527_s6 + $0x8] sm:$0xff] }
  0x2d   :  { %657 = vmatpush.bf16.msrb.mxu0 %v2129_v32  ;;  %626 = vmatmul.bf16.vlgmr.msra.gmra.mxu1 %v82_v43 }
  0x2e   :  { %670 = vmatpush.bf16.msrb.mxu1 %v2137_v35  ;;  %639 = vmatmul.bf16.vlgmr.msra.gmra.mxu2 %v83_v40  ;;  %v2154_v35 = vld [vmem:[%s2525_s4] sm:$0xff] }
  0x2f   :  { %683 = vmatpush.bf16.msrb.mxu2 %v2145_v38  ;;  %652 = vmatmul.bf16.vlgmr.msra.gmra.mxu3 %v84_v42  ;;  %v2248_v38 = vld [vmem:[%s2524_s3] ss:$0 sm:$0xff]  ;;  %v2176_v42 = vld [vmem:[%s2529_s8 + $0x30] sm:$0xff] }
  0x30   :  { %696 = vmatpush.bf16.msrb.mxu3 %v2153_v39  ;;  %v2177_v39 = vld [vmem:[%s2529_s8 + $0x38] sm:$0xff] }
  0x31   :  { %658 = vmatpush.bf16.msrb.mxu0 %v2128_v44  ;;  %v2175_v44 = vld [vmem:[%s2529_s8 + $0x28] sm:$0xff] }
  0x32   :  { %671 = vmatpush.bf16.msrb.mxu1 %v2136_v45 }
  0x33   :  { %684 = vmatpush.bf16.msrb.mxu2 %v2144_v46  ;;  %v2174_v46 = vld [vmem:[%s2529_s8 + $0x20] sm:$0xff] }
  0x34   :  { %697 = vmatpush.bf16.msrb.mxu3 %v2152_v47 }
  0x35   :  { %659 = vmatpush.bf16.msrb.mxu0 %v2127_v48 }
  0x36   :  { %672 = vmatpush.bf16.msrb.mxu1 %v2135_v49 }
  0x37   :  { %685 = vmatpush.bf16.msrb.mxu2 %v2143_v50 }
  0x38   :  { %698 = vmatpush.bf16.msrb.mxu3 %v2151_v51 }
  0x39   :  { %660 = vmatpush.bf16.msrb.mxu0 %v2126_v52 }
  0x3a   :  { %673 = vmatpush.bf16.msrb.mxu1 %v2134_v53 }
  0x3b   :  { %686 = vmatpush.bf16.msrb.mxu2 %v2142_v54 }
  0x3c   :  { %699 = vmatpush.bf16.msrb.mxu3 %v2150_v55 }
  0x3d   :  { %661 = vmatpush.bf16.msrb.mxu0 %v2125_v56 }
  0x3e   :  { %674 = vmatpush.bf16.msrb.mxu1 %v2133_v57 }
  0x3f   :  { %687 = vmatpush.bf16.msrb.mxu2 %v2141_v58 }
  0x40   :  { %700 = vmatpush.bf16.msrb.mxu3 %v2149_v59 }
  0x41   :  { %662 = vmatpush.bf16.msrb.mxu0 %v2124_v60 }
  0x42   :  { %675 = vmatpush.bf16.msrb.mxu1 %v2132_v61 }
  0x43   :  { %688 = vmatpush.bf16.msrb.mxu2 %v2140_v62 }
  0x44   :  { %701 = vmatpush.bf16.msrb.mxu3 %v2148_v63  ;;  %v2173_v63 = vld [vmem:[%s2529_s8 + $0x18] sm:$0xff] }
  0x45   :  { %663 = vmatpush.bf16.msrb.mxu0 %v2123_v0  ;;  %v2172_v0 = vld [vmem:[%s2529_s8 + $0x10] sm:$0xff] }
  0x46   :  { %676 = vmatpush.bf16.msrb.mxu1 %v2131_v1  ;;  %v2171_v1 = vld [vmem:[%s2529_s8 + $0x8] sm:$0xff] }
  0x47   :  { %689 = vmatpush.bf16.msrb.mxu2 %v2139_v2  ;;  %v2170_v2 = vld [vmem:[%s2529_s8] sm:$0xff] }
  0x48   :  { %702 = vmatpush.bf16.msrb.mxu3 %v2147_v3  ;;  %v2060_v3 = vld [vmem:[#allocation4 + $0x1c0] sm:$0xf] }
  0x49   :  { %664 = vmatpush.bf16.msrb.mxu0 %v2122_v4  ;;  %v2238_v4 = vld [vmem:[#allocation4 + $0x1dc] sm:$0xf0] }
  0x4a   :  { %677 = vmatpush.bf16.msrb.mxu1 %v2130_v5  ;;  %v2234_v5 = vld [vmem:[#allocation4 + $0x1c4] sm:$0xf] }
  0x4b   :  { %690 = vmatpush.bf16.msrb.mxu2 %v2138_v6  ;;  %v2061_v6 = vor.u32 %v2238_v4, %v2060_v3  ;;  %v2065_v10 = vor.u32 %v2234_v5, %v2062_v7  ;;  %v2198_v3 = vld [vmem:[#allocation4 + $0x9c] sm:$0xf0]  ;;  %v2194_v4 = vld [vmem:[#allocation4 + $0x84] sm:$0xf] }
  0x4c   :  { %703 = vmatpush.bf16.msrb.mxu3 %v2146_v9  ;;  %665 = vmatmul.bf16.vlgmr.msrb.gmra.mxu0 %v85_v12  ;;  %v2239_v9 = vld [vmem:[#allocation4 + $0x1e4] sm:$0xf0]  ;;  %v2235_v12 = vld [vmem:[#allocation4 + $0x1cc] sm:$0xf]  ;;  %v1902_v5 = vld [vmem:[#allocation4 + $0xa0] sm:$0xf0] }
  0x4d   :  { %678 = vmatmul.bf16.vlgmr.msrb.gmra.mxu1 %v86_v13  ;;  %779 = vmatpush.bf16.msra.mxu0 %v2161_v16  ;;  %v2069_v11 = vor.u32 %v2239_v9, %v2068_v8  ;;  %v2070_v13 = vld [vmem:[#allocation4 + $0x1e8] sm:$0xf0]  ;;  %v2230_v16 = vld [vmem:[#allocation4 + $0x19c] sm:$0xf0]  ;;  %v1908_v8 = vld [vmem:[#allocation4 + $0x88] sm:$0xf] }
  0x4e   :  { %691 = vmatmul.bf16.vlgmr.msrb.gmra.mxu2 %v87_v14  ;;  %860 = vmatpush.bf16.msra.mxu1 %v2169_v17  ;;  %v2028_v14 = vld [vmem:[#allocation4 + $0x180] sm:$0xf]  ;;  %v2226_v17 = vld [vmem:[#allocation4 + $0x184] sm:$0xf]  ;;  %v2199_v9 = vld [vmem:[#allocation4 + $0xa4] sm:$0xf0] }
  0x4f   :  { %704 = vmatmul.bf16.vlgmr.msrb.gmra.mxu3 %v88_v15  ;;  %947 = vmatpush.bf16.msra.mxu2 %v2177_v39  ;;  %v2073_v15 = vor.u32 %v2235_v12, %v2070_v13  ;;  %v2214_v39 = vld [vmem:[#allocation4 + $0x11c] sm:$0xf0]  ;;  %v1905_v13 = vor.u32 %v2194_v4, %v1902_v5  ;;  %v2054_v4 = vld [vmem:[#allocation4 + $0x1b8] sm:$0xf0] }
  0x50   :  { %1364 = vmatpush.bf16.msra.mxu3 %v2061_v6 }
  0x51   :  { %780 = vmatpush.bf16.msra.mxu0 %v2160_v18  ;;  %v2030_v18 = vld [vmem:[#allocation4 + $0x1a0] sm:$0xf0] }
  0x52   :  { %861 = vmatpush.bf16.msra.mxu1 %v2168_v19  ;;  %v2029_v19 = vor.u32 %v2230_v16, %v2028_v14  ;;  %v1909_v14 = vor.u32 %v2199_v9, %v1908_v8  ;;  %v2190_v16 = vld [vmem:[#allocation4 + $0x5c] sm:$0xf0]  ;;  %v2012_v9 = vld [vmem:[#allocation4 + $0x150] sm:$0xf] }
  0x53   :  { %948 = vmatpush.bf16.msra.mxu2 %v2176_v42  ;;  %v1966_v42 = vld [vmem:[#allocation4 + $0x120] sm:$0xf0] }
  0x54   :  { %1365 = vmatpush.bf16.msra.mxu3 %v2029_v19  ;;  %v1870_v19 = vld [vmem:[#allocation4 + $0x60] sm:$0xf0] }
  0x55   :  { %781 = vmatpush.bf16.msra.mxu0 %v2159_v20  ;;  %v2033_v20 = vor.u32 %v2226_v17, %v2030_v18  ;;  %v2186_v17 = vld [vmem:[#allocation4 + $0x44] sm:$0xf] }
  0x56   :  { %862 = vmatpush.bf16.msra.mxu1 %v2167_v21  ;;  %v2036_v21 = vld [vmem:[#allocation4 + $0x188] sm:$0xf] }
  0x57   :  { %949 = vmatpush.bf16.msra.mxu2 %v2175_v44  ;;  %v2215_v44 = vld [vmem:[#allocation4 + $0x124] sm:$0xf0] }
  0x59   :  { %782 = vmatpush.bf16.msra.mxu0 %v2158_v22  ;;  %v2231_v22 = vld [vmem:[#allocation4 + $0x1a4] sm:$0xf0] }
  0x5a   :  { %863 = vmatpush.bf16.msra.mxu1 %v2166_v23  ;;  %v2227_v23 = vld [vmem:[#allocation4 + $0x18c] sm:$0xf] }
  0x5b   :  { %950 = vmatpush.bf16.msra.mxu2 %v2174_v46  ;;  %v1974_v46 = vld [vmem:[#allocation4 + $0x128] sm:$0xf0] }
  0x5d   :  { %783 = vmatpush.bf16.msra.mxu0 %v2157_v24  ;;  %v2037_v24 = vor.u32 %v2231_v22, %v2036_v21  ;;  %v2191_v21 = vld [vmem:[#allocation4 + $0x64] sm:$0xf0]  ;;  %v2249_v22 = vld [vmem:[%s2526_s5] ss:$0 sm:$0xff] }
  0x5e   :  { %864 = vmatpush.bf16.msra.mxu1 %v2165_v25  ;;  %v2038_v25 = vld [vmem:[#allocation4 + $0x1a8] sm:$0xf0] }
  0x5f   :  { %951 = vmatpush.bf16.msra.mxu2 %v2173_v63 }
  0x61   :  { %784 = vmatpush.bf16.msra.mxu0 %v2156_v27  ;;  %v2222_v27 = vld [vmem:[#allocation4 + $0x15c] sm:$0xf0] }
  0x62   :  { %865 = vmatpush.bf16.msra.mxu1 %v2164_v28  ;;  %v2041_v28 = vor.u32 %v2227_v23, %v2038_v25  ;;  %v2187_v25 = vld [vmem:[#allocation4 + $0x4c] sm:$0xf] }
  0x63   :  { %952 = vmatpush.bf16.msra.mxu2 %v2172_v0  ;;  %v1900_v0 = vld [vmem:[#allocation4 + $0x80] sm:$0xf] }
  0x64   :  { %v1901_v12 = vor.u32 %v2198_v3, %v1900_v0  ;;  %v2046_v0 = vld [vmem:[#allocation4 + $0x1b0] sm:$0xf0]  ;;  %v2229_v3 = vld [vmem:[#allocation4 + $0x19c] sm:$0xf] }
  0x65   :  { %785 = vmatpush.bf16.msra.mxu0 %v2155_v30  ;;  %v1998_v30 = vld [vmem:[#allocation4 + $0x160] sm:$0xf0]  ;;  %v2057_v8 = vor.u32 %v2229_v3, %v2054_v4  ;;  %v1852_v4 = vld [vmem:[#allocation4 + $0x10] sm:$0xf] }
  0x66   :  { %866 = vmatpush.bf16.msra.mxu1 %v2163_v31  ;;  %v2004_v31 = vld [vmem:[#allocation4 + $0x148] sm:$0xf] }
  0x67   :  { %953 = vmatpush.bf16.msra.mxu2 %v2171_v1 }
  0x69   :  { %786 = vmatpush.bf16.msra.mxu0 %v2154_v35  ;;  %v2006_v35 = vld [vmem:[#allocation4 + $0x168] sm:$0xf0] }
  0x6a   :  { %867 = vmatpush.bf16.msra.mxu1 %v2162_v36 }
  0x6b   :  { %954 = vmatpush.bf16.msra.mxu2 %v2170_v2 }
  0x6d   :  { %1377 = vmatpush.bf16.msrb.mxu0 %v2065_v10  ;;  %v2195_v10 = vld [vmem:[#allocation4 + $0x8c] sm:$0xf] }
  0x6e   :  { %1390 = vmatpush.bf16.msrb.mxu1 %v2069_v11  ;;  %v1910_v11 = vld [vmem:[#allocation4 + $0xa8] sm:$0xf0] }
  0x6f   :  { %1403 = vmatpush.bf16.msrb.mxu2 %v2073_v15  ;;  %v1868_v15 = vld [vmem:[#allocation4 + $0x40] sm:$0xf]  ;;  %v1913_v18 = vor.u32 %v2195_v10, %v1910_v11  ;;  %v2224_v10 = vld [vmem:[#allocation4 + $0x16c] sm:$0xf0]  ;;  %v2220_v11 = vld [vmem:[#allocation4 + $0x154] sm:$0xf] }
  0x71   :  { %1378 = vmatpush.bf16.msrb.mxu0 %v2033_v20  ;;  %v1876_v20 = vld [vmem:[#allocation4 + $0x48] sm:$0xf] }
  0x72   :  { %1391 = vmatpush.bf16.msrb.mxu1 %v2037_v24 }
  0x73   :  { %1404 = vmatpush.bf16.msrb.mxu2 %v2041_v28  ;;  %v1869_v28 = vor.u32 %v2190_v16, %v1868_v15  ;;  %v2225_v15 = vld [vmem:[#allocation4 + $0x174] sm:$0xf0] }
  0xa9   :  { %v614_v26 = vpop.f32.mrf.mxu0 }
  0xaa   :  { %v627_v29 = vpop.f32.mrf.mxu1  ;;  %v615_v43 = vadd.f32 %v2248_v38, %v614_v26  ;;  %v1996_v26 = vld [vmem:[#allocation4 + $0x140] sm:$0xf] }
  0xab   :  { %v1964_v38 = vld [vmem:[#allocation4 + $0x100] sm:$0xf] }
  0xac   :  { %v628_v45 = vadd.f32 %v627_v29, %v615_v43  ;;  %v2218_v29 = vld [vmem:[#allocation4 + $0x144] sm:$0xf]  ;;  %v1972_v43 = vld [vmem:[#allocation4 + $0x108] sm:$0xf] }
  0xad   :  { %v2001_v36 = vor.u32 %v2218_v29, %v1998_v30  ;;  %v1836_v29 = vld [vmem:[#allocation4] sm:$0xf]  ;;  %v1873_v30 = vor.u32 %v2186_v17, %v1870_v19  ;;  %v2022_v19 = vld [vmem:[#allocation4 + $0x178] sm:$0xf0] }
  0xaf   :  { %1379 = vmatpush.bf16.msrb.mxu0 %v2001_v36 }
  0xb1   :  { %v640_v32 = vpop.f32.mrf.mxu2  ;;  %v616_v34 = vpop.f32.mrf.mxu0 }
  0xb2   :  { %v653_v33 = vpop.f32.mrf.mxu3  ;;  %v629_v37 = vpop.f32.mrf.mxu1  ;;  %v641_v47 = vadd.f32 %v640_v32, %v628_v45  ;;  %v1997_v32 = vor.u32 %v2222_v27, %v1996_v26  ;;  %v2219_v34 = vld [vmem:[#allocation4 + $0x14c] sm:$0xf]  ;;  %v875_v27 = vld [vmem:[%s2522_s1] sm:$0xff] }
  0xb3   :  { %v2211_v45 = vld [vmem:[#allocation4 + $0x10c] sm:$0xf] }
  0xb4   :  { %v654_v48 = vadd.f32 %v653_v33, %v641_v47  ;;  %v2223_v33 = vld [vmem:[#allocation4 + $0x164] sm:$0xf0]  ;;  %v2250_v47 = vld [vmem:[%s2528_s7] ss:$0 sm:$0xff]  ;;  %1366 = vmatpush.bf16.msra.mxu3 %v1997_v32  ;;  %v1878_v26 = vld [vmem:[#allocation4 + $0x68] sm:$0xf0] }
  0xb5   :  { %v2005_v37 = vor.u32 %v2223_v33, %v2004_v31  ;;  %v1877_v31 = vor.u32 %v2191_v21, %v1876_v20  ;;  %v2182_v32 = vld [vmem:[#allocation4 + $0x1c] sm:$0xf0]  ;;  %v2178_v33 = vld [vmem:[#allocation4 + $0x4] sm:$0xf]  ;;  %v1881_v36 = vor.u32 %v2187_v25, %v1878_v26  ;;  %v1980_v21 = vld [vmem:[#allocation4 + $0x110] sm:$0xf] }
  0xb6   :  { %v1982_v25 = vld [vmem:[#allocation4 + $0x130] sm:$0xf0]  ;;  %v1988_v26 = vld [vmem:[#allocation4 + $0x118] sm:$0xf] }
  0xb7   :  { %1392 = vmatpush.bf16.msrb.mxu1 %v2005_v37  ;;  %v1844_v37 = vld [vmem:[#allocation4 + $0x8] sm:$0xf] }
  0xb9   :  { %v642_v40 = vpop.f32.mrf.mxu2 }
  0xba   :  { %v655_v41 = vpop.f32.mrf.mxu3  ;;  %v2210_v40 = vld [vmem:[#allocation4 + $0x104] sm:$0xf] }
  0xbb   :  { %v2009_v41 = vor.u32 %v2219_v34, %v2006_v35  ;;  %v1838_v34 = vld [vmem:[#allocation4 + $0x20] sm:$0xf0] }
  0xbd   :  { %1405 = vmatpush.bf16.msrb.mxu2 %v2009_v41 }
  0xc9   :  { %v666_v49 = vpop.f32.mrf.mxu0 }
  0xca   :  { %v679_v50 = vpop.f32.mrf.mxu1  ;;  %v667_v51 = vadd.f32 %v666_v49, %v654_v48  ;;  %v1965_v48 = vor.u32 %v2214_v39, %v1964_v38  ;;  %v1969_v49 = vor.u32 %v2210_v40, %v1966_v42  ;;  %v2183_v38 = vld [vmem:[#allocation4 + $0x24] sm:$0xf0]  ;;  %v2179_v39 = vld [vmem:[#allocation4 + $0xc] sm:$0xf] }
  0xcb   :  { %v1846_v42 = vld [vmem:[#allocation4 + $0x28] sm:$0xf0] }
  0xcc   :  { %v680_v52 = vadd.f32 %v679_v50, %v667_v51  ;;  %v1973_v50 = vor.u32 %v2215_v44, %v1972_v43  ;;  %v1932_v51 = vld [vmem:[#allocation4 + $0xc0] sm:$0xf]  ;;  %1367 = vmatpush.bf16.msra.mxu3 %v1965_v48  ;;  %1380 = vmatpush.bf16.msrb.mxu0 %v1969_v49  ;;  %v2076_v43 = vld [vmem:[#allocation4 + $0x1d0] sm:$0xf]  ;;  %v2084_v48 = vld [vmem:[#allocation4 + $0x1d8] sm:$0xf] }
  0xcd   :  { %v2240_v44 = vld [vmem:[#allocation4 + $0x1ec] sm:$0xf0] }
  0xce   :  { %1393 = vmatpush.bf16.msrb.mxu1 %v1973_v50  ;;  %v1841_v50 = vor.u32 %v2178_v33, %v1838_v34  ;;  %v1948_v33 = vld [vmem:[#allocation4 + $0xd0] sm:$0xf] }
  0xcf   :  { %v2208_v34 = vld [vmem:[#allocation4 + $0xec] sm:$0xf0] }
  0xd1   :  { %v692_v53 = vpop.f32.mrf.mxu2  ;;  %v668_v56 = vpop.f32.mrf.mxu0 }
  0xd2   :  { %v705_v54 = vpop.f32.mrf.mxu3  ;;  %v693_v55 = vadd.f32 %v692_v53, %v680_v52  ;;  %v681_v57 = vpop.f32.mrf.mxu1  ;;  %v2206_v52 = vld [vmem:[#allocation4 + $0xdc] sm:$0xf0]  ;;  %v2202_v53 = vld [vmem:[#allocation4 + $0xc4] sm:$0xf]  ;;  %v1940_v56 = vld [vmem:[#allocation4 + $0xc8] sm:$0xf] }
  0xd3   :  { %v2207_v57 = vld [vmem:[#allocation4 + $0xe4] sm:$0xf0]  ;;  %v1933_v63 = vor.u32 %v2206_v52, %v1932_v51  ;;  %v2241_v51 = vld [vmem:[#allocation4 + $0x1f4] sm:$0xf0]  ;;  %v2237_v52 = vld [vmem:[#allocation4 + $0x1dc] sm:$0xf] }
  0xd4   :  { %v706_v58 = vadd.f32 %v705_v54, %v693_v55  ;;  %v1977_v54 = vor.u32 %v2211_v45, %v1974_v46  ;;  %v1934_v55 = vld [vmem:[#allocation4 + $0xe0] sm:$0xf0]  ;;  %v1941_v2 = vor.u32 %v2207_v57, %v1940_v56  ;;  %v1837_v45 = vor.u32 %v2182_v32, %v1836_v29  ;;  %v2236_v46 = vld [vmem:[#allocation4 + $0x1d4] sm:$0xf] }
  0xd5   :  { %v1937_v1 = vor.u32 %v2202_v53, %v1934_v55  ;;  %1368 = vmatpush.bf16.msra.mxu3 %v1933_v63  ;;  %v2086_v53 = vld [vmem:[#allocation4 + $0x1f8] sm:$0xf0]  ;;  %v1849_v55 = vor.u32 %v2179_v39, %v1846_v42  ;;  %v2077_v57 = vor.u32 %v2240_v44, %v2076_v43  ;;  %v2228_v63 = vld [vmem:[#allocation4 + $0x194] sm:$0xf]  ;;  %v2209_v39 = vld [vmem:[#allocation4 + $0xf4] sm:$0xf0] }
  0xd6   :  { %v709_v59 = vmax.f32 %v706_v58, 0.0  ;;  %1406 = vmatpush.bf16.msrb.mxu2 %v1977_v54  ;;  %1394 = vmatpush.bf16.msrb.mxu1 %v1941_v2  ;;  %v1845_v54 = vor.u32 %v2183_v38, %v1844_v37  ;;  %v2233_v2 = vld [vmem:[#allocation4 + $0x1b4] sm:$0xf0]  ;;  %v1950_v37 = vld [vmem:[#allocation4 + $0xf0] sm:$0xf0] }
  0xd7   :  { %1381 = vmatpush.bf16.msrb.mxu0 %v1937_v1  ;;  %v2052_v1 = vld [vmem:[#allocation4 + $0x198] sm:$0xf]  ;;  %v2205_v42 = vld [vmem:[#allocation4 + $0xdc] sm:$0xf]  ;;  %v1916_v44 = vld [vmem:[#allocation4 + $0x90] sm:$0xf] }
  0xd8   :  { %v710_v60 = vpack.c.bf16 %v709_v59, %v709_v59  ;;  %v1956_v38 = vld [vmem:[#allocation4 + $0xd8] sm:$0xf]  ;;  %v1958_v43 = vld [vmem:[#allocation4 + $0xf8] sm:$0xf0] }
  0xd9   :  { %v694_v61 = vpop.f32.mrf.mxu2  ;;  %1369 = vmatpush.bf16.msra.mxu3 %v1901_v12  ;;  %v2013_v12 = vor.u32 %v2224_v10, %v2012_v9  ;;  %v1860_v9 = vld [vmem:[#allocation4 + $0x18] sm:$0xf] }
  0xda   :  { %v707_v62 = vpop.f32.mrf.mxu3  ;;  %787 = vmatmul.bf16.vlgmr.msra.gmra.mxu0 %v710_v60  ;;  %868 = vmatmul.bf16.vlgmr.msra.gmra.mxu1 %v710_v60  ;;  %v2203_v60 = vld [vmem:[#allocation4 + $0xcc] sm:$0xf]  ;;  %v2185_v10 = vld [vmem:[#allocation4 + $0x34] sm:$0xf0] }
  0xdb   :  { %v1942_v61 = vld [vmem:[#allocation4 + $0xe8] sm:$0xf0]  ;;  %1382 = vmatpush.bf16.msrb.mxu0 %v1905_v13  ;;  %1395 = vmatpush.bf16.msrb.mxu1 %v1909_v14  ;;  %v2014_v13 = vld [vmem:[#allocation4 + $0x170] sm:$0xf0]  ;;  %v2020_v14 = vld [vmem:[#allocation4 + $0x158] sm:$0xf] }
  0xdc   :  { %v1945_v7 = vor.u32 %v2203_v60, %v1942_v61  ;;  %v2232_v60 = vld [vmem:[#allocation4 + $0x1ac] sm:$0xf0]  ;;  %v2085_v61 = vor.u32 %v2241_v51, %v2084_v48  ;;  %v2017_v16 = vor.u32 %v2220_v11, %v2014_v13  ;;  %v2021_v17 = vor.u32 %v2225_v15, %v2020_v14  ;;  %v1918_v48 = vld [vmem:[#allocation4 + $0xb0] sm:$0xf0]  ;;  %v1924_v51 = vld [vmem:[#allocation4 + $0x98] sm:$0xf] }
  0xdd   :  { %1370 = vmatpush.bf16.msra.mxu3 %v1869_v28  ;;  %v2181_v11 = vld [vmem:[#allocation4 + $0x1c] sm:$0xf]  ;;  %v1861_v15 = vor.u32 %v2185_v10, %v1860_v9 }
  0xde   :  { %1407 = vmatpush.bf16.msrb.mxu2 %v1945_v7  ;;  %v2053_v7 = vor.u32 %v2233_v2, %v2052_v1  ;;  %v1894_v1 = vld [vmem:[#allocation4 + $0x78] sm:$0xf0] }
  0xdf   :  { %1383 = vmatpush.bf16.msrb.mxu0 %v1873_v30  ;;  %1396 = vmatpush.bf16.msrb.mxu1 %v1877_v31  ;;  %v2213_v30 = vld [vmem:[#allocation4 + $0x11c] sm:$0xf] }
  0xe0   :  { %v1990_v31 = vld [vmem:[#allocation4 + $0x138] sm:$0xf0] }
  0xe1   :  { %1371 = vmatpush.bf16.msra.mxu3 %v1837_v45  ;;  %v1993_v32 = vor.u32 %v2213_v30, %v1990_v31  ;;  %v1961_v45 = vor.u32 %v2205_v42, %v1958_v43 }
  0xe2   :  { %1408 = vmatpush.bf16.msrb.mxu2 %v1913_v18  ;;  %v2221_v18 = vld [vmem:[#allocation4 + $0x15c] sm:$0xf] }
  0xe3   :  { %1384 = vmatpush.bf16.msrb.mxu0 %v1841_v50  ;;  %1397 = vmatpush.bf16.msrb.mxu1 %v1845_v54  ;;  %v2025_v20 = vor.u32 %v2221_v18, %v2022_v19 }
  0xe5   :  { %1416 = vmatpush.bf16.msrb.mxu3 %v2077_v57  ;;  %v2192_v57 = vld [vmem:[#allocation4 + $0x6c] sm:$0xf0] }
  0xe6   :  { %1409 = vmatpush.bf16.msrb.mxu2 %v1881_v36  ;;  %v1949_v36 = vor.u32 %v2208_v34, %v1948_v33 }
  0xe7   :  { %1442 = vmatpush.bf16.msra.mxu1 %v2085_v61  ;;  %v1892_v61 = vld [vmem:[#allocation4 + $0x58] sm:$0xf] }
  0xea   :  { %1410 = vmatpush.bf16.msrb.mxu2 %v1849_v55  ;;  %v1926_v55 = vld [vmem:[#allocation4 + $0xb8] sm:$0xf0] }
  0xeb   :  { %1443 = vmatpush.bf16.msra.mxu1 %v2053_v7 }
  0xef   :  { %1444 = vmatpush.bf16.msra.mxu1 %v2021_v17  ;;  %v2251_v17 = vld [vmem:[%s2530_s9] ss:$0 sm:$0xff] }
 0x157   :  { %v788_v58 = vpop.f32.mrf.mxu0  ;;  %v869_v59 = vpop.f32.mrf.mxu1 }
 0x158   :  { %v870_v62 = vadd.f32 %v2250_v47, %v869_v59  ;;  %v789_v40 = vadd.f32 %v2249_v22, %v788_v58  ;;  %v2078_v47 = vld [vmem:[#allocation4 + $0x1f0] sm:$0xf0]  ;;  %v2044_v59 = vld [vmem:[#allocation4 + $0x190] sm:$0xf] }
 0x159   :  { %v2081_v58 = vor.u32 %v2236_v46, %v2078_v47  ;;  %v2045_v5 = vor.u32 %v2232_v60, %v2044_v59  ;;  %v2216_v22 = vld [vmem:[#allocation4 + $0x12c] sm:$0xf0]  ;;  %v2196_v47 = vld [vmem:[#allocation4 + $0x94] sm:$0xf] }
 0x15a   :  { %v873_v6 = vmul.f32 1.442695, %v870_v62  ;;  %v2089_v62 = vor.u32 %v2237_v52, %v2086_v53  ;;  %v2200_v46 = vld [vmem:[#allocation4 + $0xac] sm:$0xf0]  ;;  %v1921_v50 = vor.u32 %v2196_v47, %v1918_v48  ;;  %v2201_v52 = vld [vmem:[#allocation4 + $0xb4] sm:$0xf0] }
 0x15b   :  { %1429 = vmatpush.bf16.msra.mxu0 %v2081_v58  ;;  %1417 = vmatpush.bf16.msrb.mxu3 %v2045_v5  ;;  %v2197_v53 = vld [vmem:[#allocation4 + $0x9c] sm:$0xf]  ;;  %v1925_v54 = vor.u32 %v2201_v52, %v1924_v51  ;;  %v2188_v59 = vld [vmem:[#allocation4 + $0x54] sm:$0xf]  ;;  %v2184_v5 = vld [vmem:[#allocation4 + $0x2c] sm:$0xf0] }
 0x15c   :  { %2252 = vpow2.f32 %v873_v6  ;;  %v2049_v6 = vor.u32 %v2228_v63, %v2046_v0  ;;  %v1929_v58 = vor.u32 %v2197_v53, %v1926_v55  ;;  %v1886_v60 = vld [vmem:[#allocation4 + $0x70] sm:$0xf0]  ;;  %v2193_v63 = vld [vmem:[#allocation4 + $0x74] sm:$0xf0]  ;;  %v2189_v0 = vld [vmem:[#allocation4 + $0x5c] sm:$0xf]  ;;  %v1853_v13 = vor.u32 %v2184_v5, %v1852_v4 }
 0x15d   :  { %v1889_v2 = vor.u32 %v2188_v59, %v1886_v60  ;;  %v1893_v3 = vor.u32 %v2193_v63, %v1892_v61  ;;  %v1897_v7 = vor.u32 %v2189_v0, %v1894_v1 }
 0x15f   :  { %v790_v23 = vpop.f32.mrf.mxu0  ;;  %v871_v24 = vpop.f32.mrf.mxu1  ;;  %1430 = vmatpush.bf16.msra.mxu0 %v2049_v6  ;;  %1418 = vmatpush.bf16.msrb.mxu3 %v2013_v12  ;;  %v2180_v6 = vld [vmem:[#allocation4 + $0x14] sm:$0xf]  ;;  %v1862_v12 = vld [vmem:[#allocation4 + $0x38] sm:$0xf0] }
 0x160   :  { %v2212_v23 = vld [vmem:[#allocation4 + $0x114] sm:$0xf]  ;;  %v1981_v24 = vor.u32 %v2216_v22, %v1980_v21 }
 0x161   :  { %v1985_v28 = vor.u32 %v2212_v23, %v1982_v25  ;;  %v1026_v23 = vld [vmem:[%s2532_s11] sm:$0xff] }
 0x162   :  { %v2253_v35 = vpop.eup %2252  ;;  %v1030_v25 = vperm.slane %v1026_v23, 2  ;;  %v1028_v30 = vperm.slane %v1026_v23, 0  ;;  %v1031_v31 = vperm.slane %v1026_v23, 3  ;;  %v1035_v47 = vperm.slane %v1026_v23, 7 }
 0x163   :  { %v876_v41 = vmul.f32 %v2253_v35, %v875_v27  ;;  %1431 = vmatpush.bf16.msra.mxu0 %v2017_v16  ;;  %v2217_v27 = vld [vmem:[#allocation4 + $0x134] sm:$0xf0]  ;;  %1419 = vmatpush.bf16.msrb.mxu3 %v1981_v24  ;;  %v2204_v35 = vld [vmem:[#allocation4 + $0xd4] sm:$0xf]  ;;  %v1865_v16 = vor.u32 %v2181_v11, %v1862_v12  ;;  %v1029_v24 = vperm.slane %v1026_v23, 1 }
 0x164   :  { %v1989_v29 = vor.u32 %v2217_v27, %v1988_v26 }
 0x165   :  { %v877_v49 = vadd.f32 %v876_v41, %v789_v40  ;;  %v1953_v40 = vor.u32 %v2204_v35, %v1950_v37  ;;  %v1957_v41 = vor.u32 %v2209_v39, %v1956_v38  ;;  %v1033_v38 = vperm.slane %v1026_v23, 5 }
 0x166   :  { %1445 = vmatpush.bf16.msra.mxu1 %v1989_v29 }
 0x167   :  { %v878_v56 = vpack.c.bf16 %v877_v49, %v877_v49  ;;  %1432 = vmatpush.bf16.msra.mxu0 %v1985_v28  ;;  %1420 = vmatpush.bf16.msrb.mxu3 %v1949_v36  ;;  %v1917_v49 = vor.u32 %v2200_v46, %v1916_v44  ;;  %v1032_v46 = vperm.slane %v1026_v23, 4 }
 0x169   :  { %955 = vmatmul.bf16.vlgmr.msra.gmra.mxu2 %v878_v56  ;;  %v1884_v56 = vld [vmem:[#allocation4 + $0x50] sm:$0xf] }
 0x16a   :  { %1455 = vmatpush.bf16.msra.mxu2 %v2089_v62  ;;  %1446 = vmatpush.bf16.msra.mxu1 %v1957_v41  ;;  %v1885_v62 = vor.u32 %v2192_v57, %v1884_v56 }
 0x16b   :  { %1433 = vmatpush.bf16.msra.mxu0 %v1953_v40  ;;  %1421 = vmatpush.bf16.msrb.mxu3 %v1917_v49  ;;  %v1034_v40 = vperm.slane %v1026_v23, 6 }
 0x16e   :  { %1456 = vmatpush.bf16.msra.mxu2 %v2057_v8  ;;  %1447 = vmatpush.bf16.msra.mxu1 %v1925_v54  ;;  %v1854_v8 = vld [vmem:[#allocation4 + $0x30] sm:$0xf0] }
 0x16f   :  { %1434 = vmatpush.bf16.msra.mxu0 %v1921_v50  ;;  %1422 = vmatpush.bf16.msrb.mxu3 %v1885_v62  ;;  %v1857_v14 = vor.u32 %v2180_v6, %v1854_v8 }
 0x172   :  { %1457 = vmatpush.bf16.msra.mxu2 %v2025_v20  ;;  %1448 = vmatpush.bf16.msra.mxu1 %v1893_v3 }
 0x173   :  { %1435 = vmatpush.bf16.msra.mxu0 %v1889_v2  ;;  %1423 = vmatpush.bf16.msrb.mxu3 %v1853_v13 }
 0x176   :  { %1458 = vmatpush.bf16.msra.mxu2 %v1993_v32  ;;  %1449 = vmatpush.bf16.msra.mxu1 %v1861_v15 }
 0x177   :  { %1436 = vmatpush.bf16.msra.mxu0 %v1857_v14 }
 0x17a   :  { %1459 = vmatpush.bf16.msra.mxu2 %v1961_v45 }
 0x17e   :  { %1460 = vmatpush.bf16.msra.mxu2 %v1929_v58 }
 0x182   :  { %1461 = vmatpush.bf16.msra.mxu2 %v1897_v7 }
 0x186   :  { %1462 = vmatpush.bf16.msra.mxu2 %v1865_v16 }
 0x1ec   :  { %v956_v18 = vpop.f32.mrf.mxu2 }
 0x1ed   :  { %v957_v19 = vadd.f32 %v2251_v17, %v956_v18 }
 0x1ef   :  { %v960_v20 = vmax.f32 %v957_v19, 0.0 }
 0x1f1   :  { %v961_v21 = vpack.c.bf16 %v960_v20, %v960_v20 }
 0x1f3   :  { %1372 = vmatmul.bf16.vlgmr.msra.gmra.mxu3 %v961_v21  ;;  %1385 = vmatmul.bf16.vlgmr.msrb.gmra.mxu0 %v961_v21 }
 0x1f4   :  { %1398 = vmatmul.bf16.vlgmr.msrb.gmra.mxu1 %v961_v21  ;;  %1411 = vmatmul.bf16.vlgmr.msrb.gmra.mxu2 %v961_v21  ;;  %v958_v22 = vpop.f32.mrf.mxu2 }
 0x203   :  { %1424 = vmatmul.bf16.vlgmr.msrb.gmra.mxu3 %v961_v21  ;;  %1437 = vmatmul.bf16.vlgmr.msra.gmra.mxu0 %v961_v21 }
 0x204   :  { %1450 = vmatmul.bf16.vlgmr.msra.gmra.mxu1 %v961_v21  ;;  %1463 = vmatmul.bf16.vlgmr.msra.gmra.mxu2 %v961_v21 }
 0x270   :  { %v1386_v26 = vpop.f32.mrf.mxu0 }
 0x271   :  { %v1387_v27 = vadd.f32 %v1386_v26, %v1029_v24  ;;  %v1399_v28 = vpop.f32.mrf.mxu1 }
 0x272   :  { %v1400_v29 = vadd.f32 %v1399_v28, %v1030_v25 }
 0x273   :  { %1469 = vst [vmem:[%s2533_s12 + $0x8] sm:$0xff] %v1387_v27 }
 0x274   :  { %1470 = vst [vmem:[%s2533_s12 + $0x10] sm:$0xff] %v1400_v29 }
 0x276   :  { %v1373_v32 = vpop.f32.mrf.mxu3 }
 0x277   :  { %v1374_v33 = vadd.f32 %v1373_v32, %v1028_v30  ;;  %v1412_v34 = vpop.f32.mrf.mxu2 }
 0x278   :  { %v1413_v35 = vadd.f32 %v1412_v34, %v1031_v31  ;;  %v1388_v36 = vpop.f32.mrf.mxu0 }
 0x279   :  { %1468 = vst [vmem:[%s2533_s12] sm:$0xff] %v1374_v33  ;;  %v1401_v37 = vpop.f32.mrf.mxu1 }
 0x27a   :  { %1471 = vst [vmem:[%s2533_s12 + $0x18] sm:$0xff] %v1413_v35 }
 0x27e   :  { %v1375_v39 = vpop.f32.mrf.mxu3 }
 0x27f   :  { %v1414_v41 = vpop.f32.mrf.mxu2 }
 0x280   :  { %v1438_v42 = vpop.f32.mrf.mxu0 }
 0x281   :  { %v1439_v43 = vadd.f32 %v1438_v42, %v1033_v38  ;;  %v1451_v44 = vpop.f32.mrf.mxu1 }
 0x282   :  { %v1452_v45 = vadd.f32 %v1451_v44, %v1034_v40 }
 0x283   :  { %1473 = vst [vmem:[%s2533_s12 + $0x28] sm:$0xff] %v1439_v43 }
 0x284   :  { %1474 = vst [vmem:[%s2533_s12 + $0x30] sm:$0xff] %v1452_v45 }
 0x286   :  { %v1425_v48 = vpop.f32.mrf.mxu3 }
 0x287   :  { %v1426_v49 = vadd.f32 %v1425_v48, %v1032_v46  ;;  %v1464_v50 = vpop.f32.mrf.mxu2 }
 0x288   :  { %v1465_v51 = vadd.f32 %v1464_v50, %v1035_v47  ;;  %v1440_v52 = vpop.f32.mrf.mxu0 }
 0x289   :  { %1472 = vst [vmem:[%s2533_s12 + $0x20] sm:$0xff] %v1426_v49  ;;  %v1453_v53 = vpop.f32.mrf.mxu1 }
 0x28a   :  { %1475 = vst [vmem:[%s2533_s12 + $0x38] sm:$0xff] %v1465_v51 }
 0x28e   :  { %v1427_v54 = vpop.f32.mrf.mxu3 }
 0x28f   :  { %v1466_v55 = vpop.f32.mrf.mxu2 }
 0x290   :  { %1480 = vsyncpa [#allocation3], 1 }
 0x291   :  { %1481 = vsyncpa [#allocation5], 1 }

</bundles_post_ra>
